<compile_context>
chip_gen: v7x
topology: tpu7x:2x2x1
jax: 0.10.0
libtpu: 0.0.40
codegen_flags: <defaults>
</compile_context>

<pallas_src>
import functools

import jax
import jax.numpy as jnp
from jax.experimental import pallas as pl
from jax.experimental.pallas import tpu as pltpu

# ---------------- model config (matches the PyTorch module instance) ---------
INPUT_DIM = 16
H_DIM = 32
OUTPUT_DIM = 16
LAYER_NUM = 3          # -> 3 Linear layers: in->h, h->h, h->out
BATCH = 64             # small demo batch

LANES = 128
PACK = LANES // INPUT_DIM           # 8 batch rows packed per 128-lane slab row
assert LANES % INPUT_DIM == 0 and LANES // OUTPUT_DIM == PACK

# Up to 2048 slab rows * 8 packed rows = 16384 batch rows per grid step.
# VMEM @ tm=2048: x tile 1 MiB (f32) + out tile 1 MiB, each double-buffered,
# + ~0.3 MiB bf16 block-diag weights + ~4 MiB of (tm,256) f32 intermediates
# -> well under the 32 MiB scoped default (and v7x's 64 MiB physical).
MAX_TILE_SLAB_ROWS = 2048


def _round_up(a, b):
    return (a + b - 1) // b * b


# ------------------------------- kernel --------------------------------------
def actor_kernel(x_ref, w1_ref, b1_ref, w2_ref, b2_ref, w3_ref, b3_ref, o_ref):
    """Fused 3-layer MLP on one lane-dense batch slab tile.

    x_ref : (tm, 128) f32 -> 8 batch rows of 16 features per slab row
    w*_ref: 8-way block-diagonal weights (128,256)/(256,256)/(256,128),
            stored in the compute dtype (bf16 by default, f32 optional)
    b*_ref: tiled f32 biases (1,256)/(1,256)/(1,128)
    o_ref : (tm, 128) f32 -> 8 batch rows of 16 outputs per slab row
    """
    cdt = w1_ref.dtype                       # matmul compute dtype (bf16 / f32)
    x = x_ref[...].astype(cdt)               # cast in-kernel: x HBM stays 1x f32

    # Layer 1: Linear(input_dim, h_dim) + relu   (accumulate + epilogue in f32)
    h = jnp.dot(x, w1_ref[...], preferred_element_type=jnp.float32) + b1_ref[...]
    h = jnp.maximum(h, 0.0)

    # Layer 2: Linear(h_dim, h_dim) + relu   (layer_num - 2 == 1 hidden layer)
    h = jnp.dot(h.astype(cdt), w2_ref[...],
                preferred_element_type=jnp.float32) + b2_ref[...]
    h = jnp.maximum(h, 0.0)

    # Layer 3: Linear(h_dim, output_dim) + sigmoid (EUP slot, effectively free)
    h = jnp.dot(h.astype(cdt), w3_ref[...],
                preferred_element_type=jnp.float32) + b3_ref[...]
    o_ref[...] = jax.nn.sigmoid(h)


# --------------------------- one-time weight packing --------------------------
def pack_params(params, compute_dtype=jnp.bfloat16):
    """Expand (in,out) weights to 8-way block-diagonal, tile biases 8x.

    Call ONCE at init / whenever params change, NOT per forward call.
    Weights are stored in `compute_dtype` (bf16 default); biases stay f32
    because the epilogue runs in f32 (v5e has no bf16 VPU/EUP).
    """
    eye = jnp.eye(PACK, dtype=jnp.float32)

    def blk(w):          # (din, dout) -> (8*din, 8*dout), w on the diagonal blocks
        return jnp.kron(eye, w.astype(jnp.float32)).astype(compute_dtype)

    def tile_b(b):       # (1, dout) -> (1, 8*dout), f32
        return jnp.tile(b.astype(jnp.float32), (1, PACK))

    return (blk(params["w1"]), tile_b(params["b1"]),
            blk(params["w2"]), tile_b(params["b2"]),
            blk(params["w3"]), tile_b(params["b3"]))


# ------------------------------ forward wrapper --------------------------------
@functools.partial(jax.jit, static_argnames=("max_tile_rows",))
def actor_forward(x, packed_params, *, max_tile_rows=MAX_TILE_SLAB_ROWS):
    """x: (B, input_dim) f32. packed_params: output of pack_params()."""
    B = x.shape[0]
    w1, b1, w2, b2, w3, b3 = packed_params

    # Tile size: as large as allowed, but capped at ~half the slab rows so big
    # batches always produce >= 2 "parallel" grid steps (both v7x TCs get work).
    slab_rows = pl.cdiv(B, PACK)
    tm = min(max_tile_rows, _round_up(pl.cdiv(slab_rows, 2), 8))
    slab_rows_pad = _round_up(slab_rows, tm)
    b_pad = slab_rows_pad * PACK

    # Aligned batch: zero-copy reshape. Ragged batch: pad only the tail.
    if b_pad != B:
        x = jnp.pad(x, ((0, b_pad - B), (0, 0)))
    x_slab = x.reshape(slab_rows_pad, LANES)          # free row-major reshape

    grid = (slab_rows_pad // tm,)
    const = lambda a: pl.BlockSpec(a.shape, lambda i: (0, 0))   # VMEM-resident

    out_slab = pl.pallas_call(
        actor_kernel,
        out_shape=jax.ShapeDtypeStruct((slab_rows_pad, PACK * OUTPUT_DIM),
                                       jnp.float32),
        grid_spec=pltpu.PrefetchScalarGridSpec(
            num_scalar_prefetch=0,
            grid=grid,
            in_specs=[
                pl.BlockSpec((tm, LANES), lambda i: (i, 0)),       # x slab tile
                const(w1), const(b1),                              # layer 1
                const(w2), const(b2),                              # layer 2
                const(w3), const(b3),                              # layer 3
            ],
            out_specs=pl.BlockSpec((tm, PACK * OUTPUT_DIM), lambda i: (i, 0)),
        ),
        compiler_params=pltpu.CompilerParams(
            dimension_semantics=("parallel",),                     # megacore on v7x
            vmem_limit_bytes=48 * 1024 * 1024),
    )(x_slab, w1, b1, w2, b2, w3, b3)

    # NOTE: padded rows hold sigmoid(bias) garbage; always slice before use.
    return out_slab.reshape(b_pad, OUTPUT_DIM)[:B]


# --------------------------- init + reference ---------------------------------
def init_params(key):
    """Deterministic init mimicking nn.Linear's U(-1/sqrt(fan_in), 1/sqrt(fan_in))."""
    def linear(key, fan_in, fan_out):
        kw, kb = jax.random.split(key)
        bound = 1.0 / jnp.sqrt(fan_in)
        w = jax.random.uniform(kw, (fan_in, fan_out), jnp.float32, -bound, bound)
        b = jax.random.uniform(kb, (1, fan_out), jnp.float32, -bound, bound)
        return w, b

    k1, k2, k3 = jax.random.split(key, 3)
    w1, b1 = linear(k1, INPUT_DIM, H_DIM)
    w2, b2 = linear(k2, H_DIM, H_DIM)
    w3, b3 = linear(k3, H_DIM, OUTPUT_DIM)
    return {"w1": w1, "b1": b1, "w2": w2, "b2": b2, "w3": w3, "b3": b3}


def actor_reference(x, p):
    """Pure-JAX f32 reference of the PyTorch forward pass."""
    h = jnp.maximum(x @ p["w1"] + p["b1"], 0.0)
    h = jnp.maximum(h @ p["w2"] + p["b2"], 0.0)
    return jax.nn.sigmoid(h @ p["w3"] + p["b3"])


if __name__ == "__main__":
    key = jax.random.PRNGKey(0)
    kx, kp, kx2 = jax.random.split(key, 3)
    params = init_params(kp)

    # Weight packing happens ONCE here, outside the per-call path.
    packed_bf16 = jax.tree.map(jax.block_until_ready,
                               pack_params(params, jnp.bfloat16))
    packed_f32 = jax.tree.map(jax.block_until_ready,
                              pack_params(params, jnp.float32))

    # Case 1: aligned batch, bf16 matmul path (default).
    x = jax.random.normal(kx, (BATCH, INPUT_DIM), jnp.float32)
    ref = actor_reference(x, params)
    out = jax.block_until_ready(actor_forward(x, packed_bf16))
    assert out.shape == (BATCH, OUTPUT_DIM)
    assert jnp.allclose(out, ref, atol=2e-2, rtol=2e-2), "bf16 path mismatch"

    # Case 2: ragged batch (exercises tail padding / remainder path), bf16.
    x2 = jax.random.normal(kx2, (13, INPUT_DIM), jnp.float32)
    ref2 = actor_reference(x2, params)
    out2 = jax.block_until_ready(actor_forward(x2, packed_bf16))
    assert out2.shape == (13, OUTPUT_DIM)
    assert jnp.allclose(out2, ref2, atol=2e-2, rtol=2e-2), "bf16 ragged mismatch"

    # Case 3: full-f32 matmul path (tight tolerance).
    out3 = jax.block_until_ready(actor_forward(x, packed_f32))
    assert jnp.allclose(out3, ref, atol=1e-4, rtol=1e-4), "f32 path mismatch"

    print("KERNEL_OK")
</pallas_src>

<mosaic_0001>
module attributes {stable_mosaic.version = 11 : i64} {
  func.func @actor_kernel(%arg0: i32, %arg1: memref<8x128xf32, #tpu.memory_space<vmem>>, %arg2: memref<128x256xbf16, #tpu.memory_space<vmem>>, %arg3: memref<1x256xf32, #tpu.memory_space<vmem>>, %arg4: memref<256x256xbf16, #tpu.memory_space<vmem>>, %arg5: memref<1x256xf32, #tpu.memory_space<vmem>>, %arg6: memref<256x128xbf16, #tpu.memory_space<vmem>>, %arg7: memref<1x128xf32, #tpu.memory_space<vmem>>, %arg8: memref<8x128xf32, #tpu.memory_space<vmem>>) attributes {dimension_semantics = [#tpu.dimension_semantics<parallel>], iteration_bounds = array<i64: 1>, scalar_prefetch = 0 : i64, scratch_operands = 0 : i64, tpu.core_type = #tpu.core_type<tc>, window_params = [{transform_indices = @transform_0, window_bounds = array<i64: 8, 128>}, {pipeline_mode = #tpu.pipeline_mode<synchronous>, transform_indices = @transform_1, window_bounds = array<i64: 128, 256>}, {pipeline_mode = #tpu.pipeline_mode<synchronous>, transform_indices = @transform_2, window_bounds = array<i64: 1, 256>}, {pipeline_mode = #tpu.pipeline_mode<synchronous>, transform_indices = @transform_3, window_bounds = array<i64: 256, 256>}, {pipeline_mode = #tpu.pipeline_mode<synchronous>, transform_indices = @transform_4, window_bounds = array<i64: 1, 256>}, {pipeline_mode = #tpu.pipeline_mode<synchronous>, transform_indices = @transform_5, window_bounds = array<i64: 256, 128>}, {pipeline_mode = #tpu.pipeline_mode<synchronous>, transform_indices = @transform_6, window_bounds = array<i64: 1, 128>}, {transform_indices = @transform_7, window_bounds = array<i64: 8, 128>}]} {
    %c0 = arith.constant 0 : index
    %c0_0 = arith.constant 0 : index
    %0 = vector.load %arg1[%c0, %c0_0] : memref<8x128xf32, #tpu.memory_space<vmem>>, vector<8x128xf32>
    %1 = arith.truncf %0 : vector<8x128xf32> to vector<8x128xbf16>
    %c0_1 = arith.constant 0 : index
    %c0_2 = arith.constant 0 : index
    %2 = vector.load %arg2[%c0_1, %c0_2] : memref<128x256xbf16, #tpu.memory_space<vmem>>, vector<128x256xbf16>
    %cst = arith.constant dense<0.000000e+00> : vector<8x256xf32>
    %3 = tpu.matmul %1, %2, %cst {dimension_numbers = #tpu.dot_dimension_numbers<[1], [0], [0], [1], [0, 0, 1, 1], [], []>} : vector<8x128xbf16>, vector<128x256xbf16>, vector<8x256xf32> -> vector<8x256xf32>
    %c0_3 = arith.constant 0 : index
    %c0_4 = arith.constant 0 : index
    %4 = vector.load %arg3[%c0_3, %c0_4] : memref<1x256xf32, #tpu.memory_space<vmem>>, vector<1x256xf32>
    %5 = vector.broadcast %4 : vector<1x256xf32> to vector<8x256xf32>
    %6 = arith.addf %3, %5 : vector<8x256xf32>
    %cst_5 = arith.constant 0.000000e+00 : f32
    %7 = vector.broadcast %cst_5 : f32 to vector<8x256xf32>
    %8 = arith.maximumf %6, %7 : vector<8x256xf32>
    %9 = arith.truncf %8 : vector<8x256xf32> to vector<8x256xbf16>
    %c0_6 = arith.constant 0 : index
    %c0_7 = arith.constant 0 : index
    %10 = vector.load %arg4[%c0_6, %c0_7] : memref<256x256xbf16, #tpu.memory_space<vmem>>, vector<256x256xbf16>
    %cst_8 = arith.constant dense<0.000000e+00> : vector<8x256xf32>
    %11 = tpu.matmul %9, %10, %cst_8 {dimension_numbers = #tpu.dot_dimension_numbers<[1], [0], [0], [1], [0, 0, 1, 1], [], []>} : vector<8x256xbf16>, vector<256x256xbf16>, vector<8x256xf32> -> vector<8x256xf32>
    %c0_9 = arith.constant 0 : index
    %c0_10 = arith.constant 0 : index
    %12 = vector.load %arg5[%c0_9, %c0_10] : memref<1x256xf32, #tpu.memory_space<vmem>>, vector<1x256xf32>
    %13 = vector.broadcast %12 : vector<1x256xf32> to vector<8x256xf32>
    %14 = arith.addf %11, %13 : vector<8x256xf32>
    %cst_11 = arith.constant 0.000000e+00 : f32
    %15 = vector.broadcast %cst_11 : f32 to vector<8x256xf32>
    %16 = arith.maximumf %14, %15 : vector<8x256xf32>
    %17 = arith.truncf %16 : vector<8x256xf32> to vector<8x256xbf16>
    %c0_12 = arith.constant 0 : index
    %c0_13 = arith.constant 0 : index
    %18 = vector.load %arg6[%c0_12, %c0_13] : memref<256x128xbf16, #tpu.memory_space<vmem>>, vector<256x128xbf16>
    %cst_14 = arith.constant dense<0.000000e+00> : vector<8x128xf32>
    %19 = tpu.matmul %17, %18, %cst_14 {dimension_numbers = #tpu.dot_dimension_numbers<[1], [0], [0], [1], [0, 0, 1, 1], [], []>} : vector<8x256xbf16>, vector<256x128xbf16>, vector<8x128xf32> -> vector<8x128xf32>
    %c0_15 = arith.constant 0 : index
    %c0_16 = arith.constant 0 : index
    %20 = vector.load %arg7[%c0_15, %c0_16] : memref<1x128xf32, #tpu.memory_space<vmem>>, vector<1x128xf32>
    %21 = vector.broadcast %20 : vector<1x128xf32> to vector<8x128xf32>
    %22 = arith.addf %19, %21 : vector<8x128xf32>
    %23 = arith.negf %22 : vector<8x128xf32>
    %24 = math.exp %23 : vector<8x128xf32>
    %cst_17 = arith.constant 1.000000e+00 : f32
    %25 = vector.broadcast %cst_17 : f32 to vector<8x128xf32>
    %26 = arith.addf %25, %24 : vector<8x128xf32>
    %27 = arith.divf %25, %26 : vector<8x128xf32>
    %c0_18 = arith.constant 0 : index
    %c0_19 = arith.constant 0 : index
    %28 = vector.load %arg8[%c0_18, %c0_19] : memref<8x128xf32, #tpu.memory_space<vmem>>, vector<8x128xf32>
    tpu.vector_store %arg8[%c0_18, %c0_19], %27 {strides = array<i32>} : memref<8x128xf32, #tpu.memory_space<vmem>>, vector<8x128xf32>,
    return
  }
  func.func @transform_0(%arg0: i32) -> (i32, i32) {
    %c0_i32 = arith.constant 0 : i32
    %c0_i32_0 = arith.constant 0 : i32
    return %arg0, %c0_i32 : i32, i32
  }
  func.func @transform_1(%arg0: i32) -> (i32, i32) {
    %c0_i32 = arith.constant 0 : i32
    %c0_i32_0 = arith.constant 0 : i32
    %c0_i32_1 = arith.constant 0 : i32
    return %c0_i32, %c0_i32_0 : i32, i32
  }
  func.func @transform_2(%arg0: i32) -> (i32, i32) {
    %c0_i32 = arith.constant 0 : i32
    %c0_i32_0 = arith.constant 0 : i32
    %c0_i32_1 = arith.constant 0 : i32
    return %c0_i32, %c0_i32_0 : i32, i32
  }
  func.func @transform_3(%arg0: i32) -> (i32, i32) {
    %c0_i32 = arith.constant 0 : i32
    %c0_i32_0 = arith.constant 0 : i32
    %c0_i32_1 = arith.constant 0 : i32
    return %c0_i32, %c0_i32_0 : i32, i32
  }
  func.func @transform_4(%arg0: i32) -> (i32, i32) {
    %c0_i32 = arith.constant 0 : i32
    %c0_i32_0 = arith.constant 0 : i32
    %c0_i32_1 = arith.constant 0 : i32
    return %c0_i32, %c0_i32_0 : i32, i32
  }
  func.func @transform_5(%arg0: i32) -> (i32, i32) {
    %c0_i32 = arith.constant 0 : i32
    %c0_i32_0 = arith.constant 0 : i32
    %c0_i32_1 = arith.constant 0 : i32
    return %c0_i32, %c0_i32_0 : i32, i32
  }
  func.func @transform_6(%arg0: i32) -> (i32, i32) {
    %c0_i32 = arith.constant 0 : i32
    %c0_i32_0 = arith.constant 0 : i32
    %c0_i32_1 = arith.constant 0 : i32
    return %c0_i32, %c0_i32_0 : i32, i32
  }
  func.func @transform_7(%arg0: i32) -> (i32, i32) {
    %c0_i32 = arith.constant 0 : i32
    %c0_i32_0 = arith.constant 0 : i32
    return %arg0, %c0_i32 : i32, i32
  }
}

</mosaic_0001>

<bundles_post_ra>
// kernel: actor_forward.1
= control target key start
LH: loop header
LB: loop body
LE: loop exit
PB: predicated region body
PF: predicated region fallthrough
CT: control target
= control target key end

     0   :  { %12 = vsyncpa [#allocation3], 0  ;;  %s1016_s0 = inlined_call_operand.vmem [shape: f32[8,128], index: 0, kind: input, shape index: {}]   ;;  %s1017_s1 = inlined_call_operand.vmem [shape: bf16[128,256], index: 1, kind: input, shape index: {}]   ;;  %s1018_s2 = inlined_call_operand.vmem [shape: f32[1,256], index: 2, kind: input, shape index: {}]   ;;  %s1019_s3 = inlined_call_operand.hbm [shape: bf16[256,256], index: 3, kind: input, shape index: {}]   ;;  %s1020_s4 = inlined_call_operand.vmem [shape: f32[1,256], index: 4, kind: input, shape index: {}]   ;;  %s1021_s5 = inlined_call_operand.hbm [shape: bf16[256,128], index: 5, kind: input, shape index: {}]   ;;  %s1022_s6 = inlined_call_operand.vmem [shape: f32[1,128], index: 6, kind: input, shape index: {}]   ;;  %s1023_s7 = inlined_call_operand.vmem [shape: f32[8,128], index: 7, kind: output, shape index: {}]  }
   0x1   :  { %13 = vsyncpa [#allocation5], 0  ;;  %s882_s24 = smov [#allocation2]   ;;  %s834_s28 = scalar_lea.hbm %s1019_s3, 4096 }
   0x2   :  { %s25_s25 = sshll.u32 %s882_s24, 4  ;;  %p835_p0 = scmp.ne.s32.totalorder %s1019_s3, %s834_s28  ;;  %s26_s25 = int_to_ptr.vmem [resolvable:$true] %s25_s25 }
   0x3   :  { %p838_p1 = scmp.lt.u32.totalorder %s834_s28, %s1019_s3 }
   0x5   :  { %p840_p2 = pnand %p838_p1, %p835_p0 }
   0x7   :  { %843 = shalt.err (!%p840_p2)
}
   0x8   :  { %s844_s10 = scalar_lea.vmem %s26_s25, 4096  ;;  %p849_p4 = scmp.lt.s32.totalorder %s26_s25, %s26_s25 }
   0x9   :  { %p845_p3 = scmp.ne.s32.totalorder %s26_s25, %s844_s10  ;;  %p850_p5 = scmp.lt.s32.totalorder %s844_s10, %s844_s10 }
   0xb   :  { %p851_p6 = por %p850_p5, %p849_p4 }
   0xd   :  { %p852_p7 = pnand %p851_p6, %p845_p3 }
   0xf   :  { %855 = shalt.err (!%p852_p7)
}
  0x10   :  { %s883_s11 = smov 128   ;;  %s884_s12 = smov 8  }
  0x11   :  { %31 = dma.hbm_to_vmem [thread:$0]  %s1019_s3, 4096, %s26_s25, [#allocation3], %s883_s11, %s883_s11, %s884_s12  }
  0x12   :  { %s885_s15 = smov [#allocation4]   ;;  %s856_s19 = scalar_lea.hbm %s1021_s5, 2048 }
  0x13   :  { %s39_s16 = sshll.u32 %s885_s15, 4  ;;  %p857_p8 = scmp.ne.s32.totalorder %s1021_s5, %s856_s19  ;;  %s40_s16 = int_to_ptr.vmem [resolvable:$true] %s39_s16 }
  0x14   :  { %p860_p9 = scmp.lt.u32.totalorder %s856_s19, %s1021_s5 }
  0x16   :  { %p862_p10 = pnand %p860_p9, %p857_p8 }
  0x18   :  { %865 = shalt.err (!%p862_p10)
}
  0x19   :  { %s866_s24 = scalar_lea.vmem %s40_s16, 2048  ;;  %p871_p12 = scmp.lt.s32.totalorder %s40_s16, %s40_s16 }
  0x1a   :  { %p867_p11 = scmp.ne.s32.totalorder %s40_s16, %s866_s24  ;;  %p872_p13 = scmp.lt.s32.totalorder %s866_s24, %s866_s24 }
  0x1c   :  { %p873_p0 = por %p872_p13, %p871_p12 }
  0x1e   :  { %p874_p1 = pnand %p873_p0, %p867_p11 }
  0x20   :  { %877 = shalt.err (!%p874_p1)
}
  0x21   :  { %s886_s3 = smov 64   ;;  %s887_s25 = smov 4  }
  0x22   :  { %45 = dma.hbm_to_vmem [thread:$0]  %s1021_s5, 2048, %s40_s16, [#allocation5], %s886_s3, %s886_s3, %s887_s25  }
  0x23   :  { %878 = dma.done.wait [#allocation3], 4096  }
  0x24   :  { %879 = vsyncadd [#allocation3], 4294963200 }
  0x25   :  { %880 = dma.done.wait [#allocation5], 2048  }
  0x26   :  { %881 = vsyncadd [#allocation5], 4294965248  ;;  %v888_v0 = vmov 0   ;;  %v742_v1 = vld [vmem:[%s1017_s1 + $0x4] ss:$8 sps:$4 sm:$0xff]   ;;  %v818_v55 = vld [vmem:[#allocation4 + $0x50] sm:$0xff]   ;;  %v75_v63 = vlaneseq }
  0x27   :  { %197 = vmatprep.mubr.bf16.mxu0 %v888_v0  ;;  %v744_v2 = vld [vmem:[%s1017_s1] ss:$8 sps:$4 sm:$0xff]   ;;  %165 = vmatprep.subr.bf16.mxu0 %v742_v1  ;;  %v745_v3 = vld [vmem:[%s1017_s1 + $0x14] ss:$8 sps:$4 sm:$0xff]   ;;  %v747_v4 = vld [vmem:[%s1017_s1 + $0x10] ss:$8 sps:$4 sm:$0xff]  }
  0x28   :  { %166 = vmatpush1.bf16.msra.mxu0 %v744_v2  ;;  %v748_v5 = vld [vmem:[%s1017_s1 + $0x24] ss:$8 sps:$4 sm:$0xff]   ;;  %v750_v6 = vld [vmem:[%s1017_s1 + $0x20] ss:$8 sps:$4 sm:$0xff]   ;;  %v751_v7 = vld [vmem:[%s1017_s1 + $0x34] ss:$8 sps:$4 sm:$0xff]  }
  0x29   :  { %167 = vmatprep.subr.bf16.mxu0 %v745_v3  ;;  %v753_v8 = vld [vmem:[%s1017_s1 + $0x30] ss:$8 sps:$4 sm:$0xff]   ;;  %v754_v9 = vld [vmem:[%s1017_s1 + $0x44] ss:$8 sps:$4 sm:$0xff]   ;;  %v768_v11 = vld [vmem:[#allocation2] ss:$8 sps:$4 sm:$0xff]  }
  0x2a   :  { %v766_v10 = vld [vmem:[#allocation2 + $0x4] ss:$8 sps:$4 sm:$0xff]   ;;  %v769_v12 = vld [vmem:[#allocation2 + $0x14] ss:$8 sps:$4 sm:$0xff]   ;;  %v756_v13 = vld [vmem:[%s1017_s1 + $0x40] ss:$8 sps:$4 sm:$0xff]  }
  0x2b   :  { %414 = vmatprep.subr.bf16.mxu1 %v766_v10  ;;  %v771_v14 = vld [vmem:[#allocation2 + $0x10] ss:$8 sps:$4 sm:$0xff]   ;;  %v772_v15 = vld [vmem:[#allocation2 + $0x24] ss:$8 sps:$4 sm:$0xff]   ;;  %v757_v16 = vld [vmem:[%s1017_s1 + $0x54] ss:$8 sps:$4 sm:$0xff]  }
  0x2c   :  { %168 = vmatpush1.bf16.msra.mxu0 %v747_v4  ;;  %415 = vmatpush1.bf16.msra.mxu1 %v768_v11  ;;  %v759_v17 = vld [vmem:[%s1017_s1 + $0x50] ss:$8 sps:$4 sm:$0xff]   ;;  %v774_v18 = vld [vmem:[#allocation2 + $0x20] ss:$8 sps:$4 sm:$0xff]   ;;  %v775_v19 = vld [vmem:[#allocation2 + $0x34] ss:$8 sps:$4 sm:$0xff]  }
  0x2d   :  { %169 = vmatprep.subr.bf16.mxu0 %v748_v5  ;;  %416 = vmatprep.subr.bf16.mxu1 %v769_v12  ;;  %v760_v20 = vld [vmem:[%s1017_s1 + $0x64] ss:$8 sps:$4 sm:$0xff]   ;;  %v762_v21 = vld [vmem:[%s1017_s1 + $0x60] ss:$8 sps:$4 sm:$0xff]   ;;  %v777_v22 = vld [vmem:[#allocation2 + $0x30] ss:$8 sps:$4 sm:$0xff]  }
  0x2e   :  { %v778_v23 = vld [vmem:[#allocation2 + $0x44] ss:$8 sps:$4 sm:$0xff]   ;;  %v763_v24 = vld [vmem:[%s1017_s1 + $0x74] ss:$8 sps:$4 sm:$0xff]   ;;  %v765_v25 = vld [vmem:[%s1017_s1 + $0x70] ss:$8 sps:$4 sm:$0xff]  }
  0x2f   :  { %v55_v26 = vld [vmem:[%s1016_s0] sm:$0xff]  ;;  %v781_v28 = vld [vmem:[#allocation2 + $0x54] ss:$8 sps:$4 sm:$0xff]   ;;  %v783_v29 = vld [vmem:[#allocation2 + $0x50] ss:$8 sps:$4 sm:$0xff]   ;;  %v76_v0 = vshrl.u32 %v75_v63, 7 }
  0x30   :  { %170 = vmatpush1.bf16.msra.mxu0 %v750_v6  ;;  %417 = vmatpush1.bf16.msra.mxu1 %v771_v14  ;;  %v780_v27 = vld [vmem:[#allocation2 + $0x40] ss:$8 sps:$4 sm:$0xff]   ;;  %v784_v30 = vld [vmem:[#allocation2 + $0x64] ss:$8 sps:$4 sm:$0xff]   ;;  %v56_v31 = vpack.c.bf16 %v55_v26, %v55_v26  ;;  %v787_v33 = vld [vmem:[#allocation2 + $0x74] ss:$8 sps:$4 sm:$0xff]  }
  0x31   :  { %171 = vmatprep.subr.bf16.mxu0 %v751_v7  ;;  %418 = vmatprep.subr.bf16.mxu1 %v772_v15  ;;  %v786_v32 = vld [vmem:[#allocation2 + $0x60] ss:$8 sps:$4 sm:$0xff]   ;;  %v789_v34 = vld [vmem:[#allocation2 + $0x70] ss:$8 sps:$4 sm:$0xff]   ;;  %v790_v35 = vld [vmem:[#allocation2 + $0x84] ss:$8 sps:$4 sm:$0xff]  }
  0x32   :  { %v792_v36 = vld [vmem:[#allocation2 + $0x80] ss:$8 sps:$4 sm:$0xff]   ;;  %v793_v37 = vld [vmem:[#allocation2 + $0x94] ss:$8 sps:$4 sm:$0xff]   ;;  %v795_v38 = vld [vmem:[#allocation2 + $0x90] ss:$8 sps:$4 sm:$0xff]  }
  0x33   :  { %v796_v39 = vld [vmem:[#allocation2 + $0xa4] ss:$8 sps:$4 sm:$0xff]   ;;  %v798_v40 = vld [vmem:[#allocation2 + $0xa0] ss:$8 sps:$4 sm:$0xff]   ;;  %v799_v41 = vld [vmem:[#allocation2 + $0xb4] ss:$8 sps:$4 sm:$0xff]  }
  0x34   :  { %172 = vmatpush1.bf16.msra.mxu0 %v753_v8  ;;  %419 = vmatpush1.bf16.msra.mxu1 %v774_v18  ;;  %v801_v42 = vld [vmem:[#allocation2 + $0xb0] ss:$8 sps:$4 sm:$0xff]   ;;  %v802_v43 = vld [vmem:[#allocation2 + $0xc4] ss:$8 sps:$4 sm:$0xff]   ;;  %v804_v44 = vld [vmem:[#allocation2 + $0xc0] ss:$8 sps:$4 sm:$0xff]  }
  0x35   :  { %173 = vmatprep.subr.bf16.mxu0 %v754_v9  ;;  %420 = vmatprep.subr.bf16.mxu1 %v775_v19  ;;  %v805_v45 = vld [vmem:[#allocation2 + $0xd4] ss:$8 sps:$4 sm:$0xff]   ;;  %v807_v46 = vld [vmem:[#allocation2 + $0xd0] ss:$8 sps:$4 sm:$0xff]   ;;  %v808_v47 = vld [vmem:[#allocation2 + $0xe4] ss:$8 sps:$4 sm:$0xff]  }
  0x36   :  { %v810_v48 = vld [vmem:[#allocation2 + $0xe0] ss:$8 sps:$4 sm:$0xff]   ;;  %v811_v49 = vld [vmem:[#allocation2 + $0xf4] ss:$8 sps:$4 sm:$0xff]   ;;  %v813_v50 = vld [vmem:[#allocation2 + $0xf0] ss:$8 sps:$4 sm:$0xff]  }
  0x37   :  { %v814_v51 = vld [vmem:[#allocation4 + $0x40] sm:$0xff]   ;;  %v816_v53 = vld [vmem:[#allocation4 + $0x48] sm:$0xff]   ;;  %v819_v56 = vld [vmem:[#allocation4 + $0x10] sm:$0xff]   ;;  %v77_v1 = vsub.s32 0, %v76_v0  ;;  %v81_v3 = vsub.s32 1, %v76_v0 }
  0x38   :  { %174 = vmatpush1.bf16.msra.mxu0 %v756_v13  ;;  %421 = vmatpush1.bf16.msra.mxu1 %v777_v22  ;;  %v815_v52 = vld [vmem:[#allocation4] sm:$0xff]   ;;  %v817_v54 = vld [vmem:[#allocation4 + $0x8] sm:$0xff]   ;;  %v820_v57 = vld [vmem:[#allocation4 + $0x58] sm:$0xff]  }
  0x39   :  { %175 = vmatprep.subr.bf16.mxu0 %v757_v16  ;;  %422 = vmatprep.subr.bf16.mxu1 %v778_v23  ;;  %v821_v58 = vld [vmem:[#allocation4 + $0x18] sm:$0xff]   ;;  %v822_v59 = vld [vmem:[#allocation4 + $0x60] sm:$0xff]   ;;  %v824_v61 = vld [vmem:[#allocation4 + $0x68] sm:$0xff]  }
  0x3a   :  { %v823_v60 = vld [vmem:[#allocation4 + $0x20] sm:$0xff]   ;;  %v825_v62 = vld [vmem:[#allocation4 + $0x28] sm:$0xff]   ;;  %v826_v16 = vld [vmem:[#allocation4 + $0x70] sm:$0xff]  }
  0x3b   :  { %v73_v2 = vld [vmem:[%s1018_s2] sm:$0x3]  ;;  %v828_v18 = vld [vmem:[#allocation4 + $0x78] sm:$0xff]  }
  0x3c   :  { %176 = vmatpush1.bf16.msra.mxu0 %v759_v17  ;;  %423 = vmatpush1.bf16.msra.mxu1 %v780_v27  ;;  %v78_v4 = vrot.slane %v73_v2, %v77_v1  ;;  %v82_v5 = vrot.slane %v73_v2, %v81_v3  ;;  %v827_v17 = vld [vmem:[#allocation4 + $0x30] sm:$0xff]   ;;  %v829_v19 = vld [vmem:[#allocation4 + $0x38] sm:$0xff]  }
  0x3d   :  { %177 = vmatprep.subr.bf16.mxu0 %v760_v20  ;;  %424 = vmatprep.subr.bf16.mxu1 %v781_v28  ;;  %v242_v20 = vld [vmem:[%s1020_s4] sm:$0x3] }
  0x3e   :  { %v251_v22 = vrot.slane %v242_v20, %v81_v3 }
  0x40   :  { %178 = vmatpush1.bf16.msra.mxu0 %v762_v21  ;;  %425 = vmatpush1.bf16.msra.mxu1 %v783_v29  ;;  %v247_v21 = vrot.slane %v242_v20, %v77_v1 }
  0x41   :  { %179 = vmatprep.subr.bf16.mxu0 %v763_v24  ;;  %426 = vmatprep.subr.bf16.mxu1 %v784_v30 }
  0x44   :  { %180 = vmatpush1.bf16.msra.mxu0 %v765_v25  ;;  %427 = vmatpush1.bf16.msra.mxu1 %v786_v32 }
  0x45   :  { %428 = vmatprep.subr.bf16.mxu1 %v787_v33  ;;  %713 = vmatprep.subr.bf16.mxu0 %v814_v51 }
  0x47   :  { %198 = vmatmul.mubr.bf16.vlgmr.msra.gmra.mrb[0].mxu0 %v56_v31 }
  0x48   :  { %429 = vmatpush1.bf16.msra.mxu1 %v789_v34  ;;  %714 = vmatpush3.bf16.msra.mxu0 %v815_v52  ;;  %v695_v34 = vld [vmem:[%s1022_s6] ss:$0 sm:$0xff] }
  0x49   :  { %430 = vmatprep.subr.bf16.mxu1 %v790_v35  ;;  %715 = vmatprep.subr.bf16.mxu0 %v816_v53 }
  0x4c   :  { %431 = vmatpush1.bf16.msra.mxu1 %v792_v36  ;;  %716 = vmatpush3.bf16.msra.mxu0 %v817_v54 }
  0x4d   :  { %432 = vmatprep.subr.bf16.mxu1 %v793_v37  ;;  %717 = vmatprep.subr.bf16.mxu0 %v818_v55 }
  0x50   :  { %433 = vmatpush1.bf16.msra.mxu1 %v795_v38  ;;  %718 = vmatpush3.bf16.msra.mxu0 %v819_v56 }
  0x51   :  { %434 = vmatprep.subr.bf16.mxu1 %v796_v39  ;;  %719 = vmatprep.subr.bf16.mxu0 %v820_v57 }
  0x54   :  { %435 = vmatpush1.bf16.msra.mxu1 %v798_v40  ;;  %720 = vmatpush3.bf16.msra.mxu0 %v821_v58 }
  0x55   :  { %436 = vmatprep.subr.bf16.mxu1 %v799_v41  ;;  %721 = vmatprep.subr.bf16.mxu0 %v822_v59 }
  0x58   :  { %437 = vmatpush1.bf16.msra.mxu1 %v801_v42  ;;  %722 = vmatpush3.bf16.msra.mxu0 %v823_v60 }
  0x59   :  { %438 = vmatprep.subr.bf16.mxu1 %v802_v43  ;;  %723 = vmatprep.subr.bf16.mxu0 %v824_v61 }
  0x5c   :  { %439 = vmatpush1.bf16.msra.mxu1 %v804_v44  ;;  %724 = vmatpush3.bf16.msra.mxu0 %v825_v62 }
  0x5d   :  { %440 = vmatprep.subr.bf16.mxu1 %v805_v45  ;;  %725 = vmatprep.subr.bf16.mxu0 %v826_v16 }
  0x60   :  { %441 = vmatpush1.bf16.msra.mxu1 %v807_v46  ;;  %726 = vmatpush3.bf16.msra.mxu0 %v827_v17 }
  0x61   :  { %442 = vmatprep.subr.bf16.mxu1 %v808_v47  ;;  %727 = vmatprep.subr.bf16.mxu0 %v828_v18 }
  0x64   :  { %443 = vmatpush1.bf16.msra.mxu1 %v810_v48  ;;  %728 = vmatpush3.bf16.msra.mxu0 %v829_v19 }
  0x65   :  { %444 = vmatprep.subr.bf16.mxu1 %v811_v49 }
  0x68   :  { %445 = vmatpush1.bf16.msra.mxu1 %v813_v50 }
 0x11a   :  { %v199_v6 = vpop.f32.mrb[0].mxu0 }
 0x11b   :  { %v200_v7 = vadd.f32 %v199_v6, %v78_v4  ;;  %v201_v8 = vpop.f32.mrb[1].mxu0 }
 0x11c   :  { %v202_v9 = vadd.f32 %v201_v8, %v82_v5  ;;  %v203_v10 = vpop.f32.mrb[2].mxu0 }
 0x11d   :  { %v206_v11 = vmax.f32 %v200_v7, 0.0  ;;  %v204_v12 = vpop.f32.mrb[3].mxu0 }
 0x11e   :  { %v207_v13 = vmax.f32 %v202_v9, 0.0 }
 0x11f   :  { %v208_v15 = vpack.c.bf16 %v206_v11, %v206_v11 }
 0x120   :  { %v209_v14 = vpack.c.bf16 %v207_v13, %v207_v13 }
 0x122   :  { %446 = vmatprep.mubr.bf16.mxu1 %v209_v14 }
 0x123   :  { %447 = vmatmul.mubr.bf16.vlgmr.msra.gmra.mrb[0].mxu1 %v208_v15 }
 0x1f6   :  { %v448_v23 = vpop.f32.mrb[0].mxu1 }
 0x1f7   :  { %v449_v24 = vadd.f32 %v448_v23, %v247_v21  ;;  %v450_v25 = vpop.f32.mrb[1].mxu1 }
 0x1f8   :  { %v451_v26 = vadd.f32 %v450_v25, %v251_v22  ;;  %v452_v27 = vpop.f32.mrb[2].mxu1 }
 0x1f9   :  { %v455_v28 = vmax.f32 %v449_v24, 0.0  ;;  %v453_v29 = vpop.f32.mrb[3].mxu1 }
 0x1fa   :  { %v456_v30 = vmax.f32 %v451_v26, 0.0 }
 0x1fb   :  { %v457_v32 = vpack.c.bf16 %v455_v28, %v455_v28 }
 0x1fc   :  { %v458_v31 = vpack.c.bf16 %v456_v30, %v456_v30 }
 0x1fe   :  { %626 = vmatprep.mubr.bf16.mxu0 %v458_v31 }
 0x1ff   :  { %627 = vmatmul.mubr.bf16.vlgmr.msra.gmra.mrb[4].mxu0 %v457_v32 }
 0x2d2   :  { %v729_v33 = vpop.f32.mrb[4].mxu0 }
 0x2d3   :  { %v730_v35 = vpop.f32.mrb[5].mxu0 }
 0x2d4   :  { %v731_v36 = vadd.f32 %v730_v35, %v729_v33  ;;  %v732_v37 = vpop.f32.mrb[6].mxu0 }
 0x2d5   :  { %v733_v38 = vpop.f32.mrb[7].mxu0 }
 0x2d6   :  { %v629_v39 = vadd.f32 %v731_v36, %v695_v34 }
 0x2d8   :  { %v712_v40 = vmul.f32 -1.442695, %v629_v39 }
 0x2da   :  { %830 = vpow2.f32 %v712_v40 }
 0x2e4   :  { %v831_v41 = vpop.eup %830 }
 0x2e5   :  { %v637_v42 = vadd.f32 1.0, %v831_v41 }
 0x2e7   :  { %832 = vrcp.f32 %v637_v42 }
 0x2f1   :  { %v833_v43 = vpop.eup %832 }
 0x2f2   :  { %640 = vst [vmem:[%s1023_s7] sm:$0xff] %v833_v43 }
 0x2f3   :  { %645 = vsyncpa [#allocation3], 1 }
 0x2f4   :  { %646 = vsyncpa [#allocation5], 1 }

</bundles_post_ra>
